<compile_context>
chip_gen: v5e
topology: v5e:2x2
jax: 0.10.0
libtpu: 0.0.40
codegen_flags: <defaults>
</compile_context>

<pallas_src>
import functools
import math

import jax
import jax.numpy as jnp
from jax.experimental import pallas as pl
from jax.experimental.pallas import tpu as pltpu


def _arcface_kernel(x_ref, wt_ref, lab_ref, out_ref,
                    xn_ref, m_ref, l_ref, tgt_ref,
                    *, s, margin, rows, c_in, tile_c, c_out, c_pad, eps):
    j = pl.program_id(1)
    nj = pl.num_programs(1)
    cos_m = math.cos(margin)
    sin_m = math.sin(margin)

    # ---- init (once per row tile): normalize x over the seq axis, cache it,
    #      and reset the online-softmax accumulators. --------------------------
    @pl.when(j == 0)
    def _init():
        x = x_ref[...].astype(jnp.float32)                      # (tb, seq, C_in)
        sumsq = jnp.sum(x * x, axis=1, keepdims=True)           # (tb, 1, C_in)
        inv = jax.lax.rsqrt(jnp.maximum(sumsq, eps * eps))      # EUP rsqrt
        xn_ref[...] = (x * inv).reshape(rows, c_in).astype(xn_ref.dtype)
        m_ref[...] = jnp.full_like(m_ref, -jnp.inf)
        l_ref[...] = jnp.zeros_like(l_ref)
        tgt_ref[...] = jnp.zeros_like(tgt_ref)

    # ---- per class tile -------------------------------------------------------
    cosine = jnp.dot(xn_ref[...], wt_ref[...],
                     preferred_element_type=jnp.float32)         # (rows, tile_c)
    cosine = jnp.clip(cosine, -1.0, 1.0)

    lab = lab_ref[...]                                           # (rows, 1) int32
    col = jax.lax.broadcasted_iota(jnp.int32, (rows, tile_c), 1) + j * tile_c
    onehot = col == lab                                          # (rows, tile_c)

    # Per-row target cosine (0 when the target class is not in this tile);
    # phi = cos(arccos(x) + m) computed only on the (rows, 1) vector.
    tgt_cos = jnp.sum(jnp.where(onehot, cosine, 0.0), axis=-1, keepdims=True)
    sine = jnp.sqrt(jnp.maximum(1.0 - tgt_cos * tgt_cos, 0.0))
    phi = tgt_cos * cos_m - sine * sin_m                         # (rows, 1)

    z = jnp.where(onehot, phi, cosine) * s                       # (rows, tile_c)
    if c_pad != c_out:
        # Padded (non-existent) classes: push to -inf-ish so they vanish from
        # the softmax.  Labels are always < c_out so onehot never hits them.
        z = jnp.where(col < c_out, z, -1e30)

    # Online softmax / logsumexp update.
    m_prev = m_ref[...]
    m_new = jnp.maximum(m_prev, jnp.max(z, axis=-1, keepdims=True))
    alpha = jnp.exp(m_prev - m_new)
    l_ref[...] = alpha * l_ref[...] + jnp.sum(jnp.exp(z - m_new), axis=-1,
                                              keepdims=True)
    m_ref[...] = m_new

    # Accumulate the scaled target logit (hit in exactly one class tile per row).
    row_has = jnp.logical_and(lab >= j * tile_c, lab < (j + 1) * tile_c)
    tgt_ref[...] += jnp.where(row_has, phi * s, 0.0)

    # ---- finalize (last class tile): per-row cross-entropy contribution. -----
    @pl.when(j == nj - 1)
    def _fin():
        out_ref[...] = m_ref[...] + jnp.log(l_ref[...]) - tgt_ref[...]


def arcface_loss(logits, weight, labels, s=64.0, margin=0.5,
                 tile_c=None, tile_b=None,
                 mxu_dtype=jnp.bfloat16, x_dtype=None):
    """ArcFace loss. `logits` (bs, seq, C_in), `weight` (C_out, C_in), `labels` (bs, seq)."""
    bs, seq, c_in = logits.shape
    c_out, c_in_w = weight.shape
    assert c_in_w == c_in, "weight last dim must match logits channel dim"
    n = bs * seq
    eps = 1e-12
    if x_dtype is None:
        x_dtype = mxu_dtype

    # ---- one-time wrapper prep (tiny next to the (N, C_out) matmul) ----------
    # Pre-normalize each class row and pre-transpose so the class axis becomes
    # the lane-dense output axis of the in-kernel matmul.
    w = weight.astype(jnp.float32)
    wn = w * jax.lax.rsqrt(jnp.maximum(jnp.sum(w * w, axis=1, keepdims=True),
                                       eps * eps))
    wn_t = wn.T                                                  # (C_in, C_out) f32

    # ---- class-tile selection + padding --------------------------------------
    if tile_c is None:
        lane_pad = int(pl.cdiv(c_out, 128)) * 128
        # If the bf16 weight fits comfortably (incl. v7x's 64 MiB VMEM), keep it
        # VMEM-resident via a single class tile (block index never changes ->
        # DMA'd once for the whole grid).  Otherwise stream 2048-wide tiles.
        if c_in * lane_pad * 2 <= 24 * 1024 * 1024:
            tile_c = lane_pad
        else:
            tile_c = 2048
    tile_c = int(tile_c)
    c_pad = int(pl.cdiv(c_out, tile_c)) * tile_c
    if c_pad != c_out:
        wn_t = jnp.pad(wn_t, ((0, 0), (0, c_pad - c_out)))
    wn_t = wn_t.astype(mxu_dtype)                                # (C_in, C_pad)

    # ---- row-tile selection ---------------------------------------------------
    if tile_b is None:
        target_rows = 1024                     # MXU-bound on v5e/v6e/v7x
        tile_b = 1
        for d in range(bs, 0, -1):             # whole batches per row tile
            if bs % d == 0 and d * seq <= max(target_rows, seq):
                tile_b = d
                break
        # Keep >= 2 row tiles when possible so the "parallel" axis can shard
        # across v7x's 2 TensorCores (free when the weight is VMEM-resident).
        if bs // tile_b == 1 and bs > 1:
            for d in range(tile_b - 1, 0, -1):
                if bs % d == 0:
                    tile_b = d
                    break
    tile_b = int(tile_b)
    assert bs % tile_b == 0, "tile_b must divide the batch size"
    rows = tile_b * seq
    grid = (bs // tile_b, c_pad // tile_c)
    assert rows % 8 == 0 or grid[0] == 1, "row tile should be sublane (8) aligned"

    x = logits.astype(x_dtype)
    labels_flat = labels.reshape(n, 1).astype(jnp.int32)

    kernel = functools.partial(
        _arcface_kernel, s=float(s), margin=float(margin),
        rows=rows, c_in=c_in, tile_c=tile_c, c_out=c_out, c_pad=c_pad, eps=eps)

    # ---- VMEM budget: footprint-derived (works within v7x's 64 MiB/TC) -------
    itemx = jnp.dtype(x_dtype).itemsize
    itemw = jnp.dtype(mxu_dtype).itemsize
    footprint = (2 * tile_b * seq * c_in * itemx     # x double-buffer
                 + 2 * c_in * tile_c * itemw         # weight double-buffer
                 + 2 * rows * 4                      # labels double-buffer
                 + 2 * rows * 4                      # output double-buffer
                 + rows * c_in * itemw               # cached normalized x
                 + 3 * rows * 4)                     # m, l, tgt accumulators
    vmem_limit = max(32 << 20, min(int(footprint * 1.25) + (4 << 20), 100 << 20))

    cost = pl.CostEstimate(
        flops=int(2 * n * c_in * c_pad + 8 * n * c_pad),
        transcendentals=int(n * c_pad + 2 * n),
        bytes_accessed=int(n * c_in * itemx
                           + (grid[0] if grid[1] > 1 else 1) * c_in * c_pad * itemw
                           + n * 4 + n * 4))

    per_row = pl.pallas_call(
        kernel,
        out_shape=jax.ShapeDtypeStruct((n, 1), jnp.float32),
        grid_spec=pltpu.PrefetchScalarGridSpec(
            num_scalar_prefetch=0,
            grid=grid,
            in_specs=[
                pl.BlockSpec((tile_b, seq, c_in), lambda i, j: (i, 0, 0)),
                # Single class tile => invariant block index => weight resident.
                # (pl.Buffered(3) on this spec is a cheap knob to sweep when
                #  streaming many short class tiles.)
                pl.BlockSpec((c_in, tile_c), lambda i, j: (0, j)),
                pl.BlockSpec((rows, 1), lambda i, j: (i, 0)),
            ],
            out_specs=pl.BlockSpec((rows, 1), lambda i, j: (i, 0)),
            scratch_shapes=[
                pltpu.VMEM((rows, c_in), mxu_dtype),    # cached normalized x rows
                pltpu.VMEM((rows, 1), jnp.float32),     # running max m
                pltpu.VMEM((rows, 1), jnp.float32),     # running sum-exp l
                pltpu.VMEM((rows, 1), jnp.float32),     # scaled target logit
            ]),
        compiler_params=pltpu.CompilerParams(
            dimension_semantics=("parallel", "arbitrary"),
            vmem_limit_bytes=vmem_limit),
        cost_estimate=cost,
    )(x, wn_t, labels_flat)

    return jnp.mean(per_row)


def arcface_ref(logits, weight, labels, s=64.0, margin=0.5):
    """Pure-JAX reference mirroring the torch code (including the arccos/cos path)."""
    eps = 1e-12
    xn = logits / jnp.maximum(jnp.linalg.norm(logits, axis=1, keepdims=True), eps)
    wn = weight / jnp.maximum(jnp.linalg.norm(weight, axis=1, keepdims=True), eps)
    z = jnp.einsum("blc,kc->blk", xn, wn)
    z = jnp.clip(z, -1.0, 1.0).reshape(-1, z.shape[-1])
    lab = labels.reshape(-1)
    idx = jnp.arange(lab.shape[0])
    theta = jnp.arccos(z)
    theta = theta.at[idx, lab].add(margin)
    z = jnp.cos(theta) * s
    lse = jax.scipy.special.logsumexp(z, axis=-1)
    tgt = z[idx, lab]
    return jnp.mean(lse - tgt)


if __name__ == "__main__":
    key = jax.random.PRNGKey(0)
    k1, k2, k3, k4, k5, k6 = jax.random.split(key, 6)

    # Case 1: module-consistent small shapes (bs=2, seq=8, num_classes=256).
    bs, seq, num_classes = 2, 8, 256
    logits = jax.random.normal(k1, (bs, seq, num_classes), dtype=jnp.float32)
    labels = jax.random.randint(k2, (bs, seq), 0, num_classes, dtype=jnp.int32)
    # weight ~ Normal(0, 0.01), shape (num_classes, num_classes), deterministic.
    weight = 0.01 * jax.random.normal(k3, (num_classes, num_classes), dtype=jnp.float32)

    ref = arcface_ref(logits, weight, labels)

    # (a) f32 operands, default tiling: tight numerical check of the kernel math.
    loss_f32 = jax.block_until_ready(
        arcface_loss(logits, weight, labels,
                     mxu_dtype=jnp.float32, x_dtype=jnp.float32))
    assert bool(jnp.isfinite(loss_f32)), "f32 kernel produced non-finite loss"
    assert bool(jnp.allclose(loss_f32, ref, atol=2e-3, rtol=2e-3)), (loss_f32, ref)

    # (b) f32 operands, explicit 2-D tiling exercising the online-softmax path.
    loss_t = jax.block_until_ready(
        arcface_loss(logits, weight, labels, tile_c=128, tile_b=1,
                     mxu_dtype=jnp.float32, x_dtype=jnp.float32))
    assert bool(jnp.isfinite(loss_t)), "tiled f32 kernel produced non-finite loss"
    assert bool(jnp.allclose(loss_t, ref, atol=2e-3, rtol=2e-3)), (loss_t, ref)

    # (c) default fast path: bf16 MXU operands + bf16 x stream, f32 accumulation.
    loss_bf16 = jax.block_until_ready(arcface_loss(logits, weight, labels))
    assert bool(jnp.isfinite(loss_bf16)), "bf16 kernel produced non-finite loss"
    assert bool(abs(float(loss_bf16) - float(ref)) <= 0.05 * abs(float(ref)) + 0.5), \
        (loss_bf16, ref)

    # Case 2: class count NOT a multiple of the tile -> exercises padding/masking.
    nc2 = 200
    logits2 = jax.random.normal(k4, (bs, seq, nc2), dtype=jnp.float32)
    labels2 = jax.random.randint(k5, (bs, seq), 0, nc2, dtype=jnp.int32)
    weight2 = 0.01 * jax.random.normal(k6, (nc2, nc2), dtype=jnp.float32)
    ref2 = arcface_ref(logits2, weight2, labels2)
    loss2 = jax.block_until_ready(
        arcface_loss(logits2, weight2, labels2, tile_c=128, tile_b=1,
                     mxu_dtype=jnp.float32, x_dtype=jnp.float32))
    assert bool(jnp.isfinite(loss2)), "padded kernel produced non-finite loss"
    assert bool(jnp.allclose(loss2, ref2, atol=2e-3, rtol=2e-3)), (loss2, ref2)

    print("KERNEL_OK")
</pallas_src>

<mosaic_0001>
module attributes {stable_mosaic.version = 11 : i64} {
  func.func @_arcface_kernel(%arg0: i32, %arg1: i32, %arg2: memref<1x8x256xf32, #tpu.memory_space<vmem>>, %arg3: memref<256x256xf32, #tpu.memory_space<vmem>>, %arg4: memref<8x1xi32, #tpu.memory_space<vmem>>, %arg5: memref<8x1xf32, #tpu.memory_space<vmem>>, %arg6: memref<8x256xf32, #tpu.memory_space<vmem>>, %arg7: memref<8x1xf32, #tpu.memory_space<vmem>>, %arg8: memref<8x1xf32, #tpu.memory_space<vmem>>, %arg9: memref<8x1xf32, #tpu.memory_space<vmem>>) attributes {dimension_semantics = [#tpu.dimension_semantics<parallel>, #tpu.dimension_semantics<arbitrary>], iteration_bounds = array<i64: 2, 1>, scalar_prefetch = 0 : i64, scratch_operands = 4 : i64, tpu.core_type = #tpu.core_type<tc>, window_params = [{transform_indices = @transform_0, window_bounds = array<i64: 1, 8, 256>}, {transform_indices = @transform_1, window_bounds = array<i64: 256, 256>}, {transform_indices = @transform_2, window_bounds = array<i64: 8, 1>}, {transform_indices = @transform_3, window_bounds = array<i64: 8, 1>}]} {
    %c0_i32 = arith.constant 0 : i32
    %0 = arith.cmpi eq, %arg1, %c0_i32 : i32
    %1 = arith.extui %0 : i1 to i32
    %c0_i32_0 = arith.constant 0 : i32
    %2 = arith.cmpi ne, %1, %c0_i32_0 : i32
    scf.if %2 {
      %c0_35 = arith.constant 0 : index
      %c0_36 = arith.constant 0 : index
      %c0_37 = arith.constant 0 : index
      %71 = vector.load %arg2[%c0_35, %c0_36, %c0_37] : memref<1x8x256xf32, #tpu.memory_space<vmem>>, vector<1x8x256xf32>
      %72 = arith.mulf %71, %71 : vector<1x8x256xf32>
      %cst_38 = arith.constant dense<0.000000e+00> : vector<1x256xf32>
      %73 = vector.multi_reduction <add>, %72, %cst_38 [1] : vector<1x8x256xf32> to vector<1x256xf32>
      %74 = vector.shape_cast %73 : vector<1x256xf32> to vector<1x1x256xf32>
      %cst_39 = arith.constant 1.000000e-24 : f32
      %75 = vector.broadcast %cst_39 : f32 to vector<1x1x256xf32>
      %76 = arith.maximumf %74, %75 : vector<1x1x256xf32>
      %77 = math.rsqrt %76 : vector<1x1x256xf32>
      %78 = vector.broadcast %77 : vector<1x1x256xf32> to vector<1x8x256xf32>
      %79 = arith.mulf %71, %78 : vector<1x8x256xf32>
      %80 = vector.shape_cast %79 : vector<1x8x256xf32> to vector<8x256xf32>
      %c0_40 = arith.constant 0 : index
      %c0_41 = arith.constant 0 : index
      %81 = vector.load %arg6[%c0_40, %c0_41] : memref<8x256xf32, #tpu.memory_space<vmem>>, vector<8x256xf32>
      tpu.vector_store %arg6[%c0_40, %c0_41], %80 {strides = array<i32>} : memref<8x256xf32, #tpu.memory_space<vmem>>, vector<8x256xf32>,
      %cst_42 = arith.constant 0xFF800000 : f32
      %82 = vector.broadcast %cst_42 : f32 to vector<8x1xf32>
      %c0_43 = arith.constant 0 : index
      %c0_44 = arith.constant 0 : index
      %83 = vector.load %arg7[%c0_43, %c0_44] : memref<8x1xf32, #tpu.memory_space<vmem>>, vector<8x1xf32>
      tpu.vector_store %arg7[%c0_43, %c0_44], %82 {strides = array<i32>} : memref<8x1xf32, #tpu.memory_space<vmem>>, vector<8x1xf32>,
      %cst_45 = arith.constant 0.000000e+00 : f32
      %84 = vector.broadcast %cst_45 : f32 to vector<8x1xf32>
      %c0_46 = arith.constant 0 : index
      %c0_47 = arith.constant 0 : index
      %85 = vector.load %arg8[%c0_46, %c0_47] : memref<8x1xf32, #tpu.memory_space<vmem>>, vector<8x1xf32>
      tpu.vector_store %arg8[%c0_46, %c0_47], %84 {strides = array<i32>} : memref<8x1xf32, #tpu.memory_space<vmem>>, vector<8x1xf32>,
      %cst_48 = arith.constant 0.000000e+00 : f32
      %86 = vector.broadcast %cst_48 : f32 to vector<8x1xf32>
      %c0_49 = arith.constant 0 : index
      %c0_50 = arith.constant 0 : index
      %87 = vector.load %arg9[%c0_49, %c0_50] : memref<8x1xf32, #tpu.memory_space<vmem>>, vector<8x1xf32>
      tpu.vector_store %arg9[%c0_49, %c0_50], %86 {strides = array<i32>} : memref<8x1xf32, #tpu.memory_space<vmem>>, vector<8x1xf32>,
    } else {
    }
    %c0 = arith.constant 0 : index
    %c0_1 = arith.constant 0 : index
    %3 = vector.load %arg6[%c0, %c0_1] : memref<8x256xf32, #tpu.memory_space<vmem>>, vector<8x256xf32>
    %c0_2 = arith.constant 0 : index
    %c0_3 = arith.constant 0 : index
    %4 = vector.load %arg3[%c0_2, %c0_3] : memref<256x256xf32, #tpu.memory_space<vmem>>, vector<256x256xf32>
    %cst = arith.constant dense<0.000000e+00> : vector<8x256xf32>
    %5 = tpu.matmul %3, %4, %cst {dimension_numbers = #tpu.dot_dimension_numbers<[1], [0], [0], [1], [0, 0, 1, 1], [], []>} : vector<8x256xf32>, vector<256x256xf32>, vector<8x256xf32> -> vector<8x256xf32>
    %cst_4 = arith.constant -1.000000e+00 : f32
    %cst_5 = arith.constant 1.000000e+00 : f32
    %6 = vector.broadcast %cst_4 : f32 to vector<8x256xf32>
    %7 = arith.maximumf %6, %5 : vector<8x256xf32>
    %8 = vector.broadcast %cst_5 : f32 to vector<8x256xf32>
    %9 = arith.minimumf %8, %7 : vector<8x256xf32>
    %c0_6 = arith.constant 0 : index
    %c0_7 = arith.constant 0 : index
    %10 = vector.load %arg4[%c0_6, %c0_7] : memref<8x1xi32, #tpu.memory_space<vmem>>, vector<8x1xi32>
    %11 = tpu.iota {dimensions = array<i32: 1>} : vector<8x256xi32>
    %c256_i32 = arith.constant 256 : i32
    %12 = arith.muli %arg1, %c256_i32 : i32
    %13 = vector.broadcast %12 : i32 to vector<8x256xi32>
    %14 = arith.addi %11, %13 : vector<8x256xi32>
    %15 = vector.broadcast %10 : vector<8x1xi32> to vector<8x256xi32>
    %16 = arith.cmpi eq, %14, %15 : vector<8x256xi32>
    %cst_8 = arith.constant 0.000000e+00 : f32
    %17 = vector.broadcast %cst_8 : f32 to vector<8x256xf32>
    %18 = arith.select %16, %9, %17 : vector<8x256xi1>, vector<8x256xf32>
    %cst_9 = arith.constant dense<0.000000e+00> : vector<8xf32>
    %19 = vector.multi_reduction <add>, %18, %cst_9 [1] : vector<8x256xf32> to vector<8xf32>
    %20 = vector.shape_cast %19 : vector<8xf32> to vector<8x1xf32>
    %21 = arith.mulf %20, %20 : vector<8x1xf32>
    %cst_10 = arith.constant 1.000000e+00 : f32
    %22 = vector.broadcast %cst_10 : f32 to vector<8x1xf32>
    %23 = arith.subf %22, %21 : vector<8x1xf32>
    %cst_11 = arith.constant 0.000000e+00 : f32
    %24 = vector.broadcast %cst_11 : f32 to vector<8x1xf32>
    %25 = arith.maximumf %23, %24 : vector<8x1xf32>
    %26 = math.sqrt %25 : vector<8x1xf32>
    %cst_12 = arith.constant 0.87758255 : f32
    %27 = vector.broadcast %cst_12 : f32 to vector<8x1xf32>
    %28 = arith.mulf %20, %27 : vector<8x1xf32>
    %cst_13 = arith.constant 0.47942555 : f32
    %29 = vector.broadcast %cst_13 : f32 to vector<8x1xf32>
    %30 = arith.mulf %26, %29 : vector<8x1xf32>
    %31 = arith.subf %28, %30 : vector<8x1xf32>
    %32 = vector.shape_cast %31 : vector<8x1xf32> to vector<8x1xf32>
    %33 = vector.broadcast %32 : vector<8x1xf32> to vector<8x256xf32>
    %34 = arith.select %16, %33, %9 : vector<8x256xi1>, vector<8x256xf32>
    %cst_14 = arith.constant 6.400000e+01 : f32
    %35 = vector.broadcast %cst_14 : f32 to vector<8x256xf32>
    %36 = arith.mulf %34, %35 : vector<8x256xf32>
    %c0_15 = arith.constant 0 : index
    %c0_16 = arith.constant 0 : index
    %37 = vector.load %arg7[%c0_15, %c0_16] : memref<8x1xf32, #tpu.memory_space<vmem>>, vector<8x1xf32>
    %cst_17 = arith.constant dense<0xFF800000> : vector<8xf32>
    %38 = vector.multi_reduction <maximumf>, %36, %cst_17 [1] : vector<8x256xf32> to vector<8xf32>
    %39 = vector.shape_cast %38 : vector<8xf32> to vector<8x1xf32>
    %40 = arith.maximumf %37, %39 : vector<8x1xf32>
    %41 = arith.subf %37, %40 : vector<8x1xf32>
    %42 = math.exp %41 : vector<8x1xf32>
    %c0_18 = arith.constant 0 : index
    %c0_19 = arith.constant 0 : index
    %43 = vector.load %arg8[%c0_18, %c0_19] : memref<8x1xf32, #tpu.memory_space<vmem>>, vector<8x1xf32>
    %44 = arith.mulf %42, %43 : vector<8x1xf32>
    %45 = vector.broadcast %40 : vector<8x1xf32> to vector<8x256xf32>
    %46 = arith.subf %36, %45 : vector<8x256xf32>
    %47 = math.exp %46 : vector<8x256xf32>
    %cst_20 = arith.constant dense<0.000000e+00> : vector<8xf32>
    %48 = vector.multi_reduction <add>, %47, %cst_20 [1] : vector<8x256xf32> to vector<8xf32>
    %49 = vector.shape_cast %48 : vector<8xf32> to vector<8x1xf32>
    %50 = arith.addf %44, %49 : vector<8x1xf32>
    %c0_21 = arith.constant 0 : index
    %c0_22 = arith.constant 0 : index
    %51 = vector.load %arg8[%c0_21, %c0_22] : memref<8x1xf32, #tpu.memory_space<vmem>>, vector<8x1xf32>
    tpu.vector_store %arg8[%c0_21, %c0_22], %50 {strides = array<i32>} : memref<8x1xf32, #tpu.memory_space<vmem>>, vector<8x1xf32>,
    %c0_23 = arith.constant 0 : index
    %c0_24 = arith.constant 0 : index
    %52 = vector.load %arg7[%c0_23, %c0_24] : memref<8x1xf32, #tpu.memory_space<vmem>>, vector<8x1xf32>
    tpu.vector_store %arg7[%c0_23, %c0_24], %40 {strides = array<i32>} : memref<8x1xf32, #tpu.memory_space<vmem>>, vector<8x1xf32>,
    %c256_i32_25 = arith.constant 256 : i32
    %53 = arith.muli %arg1, %c256_i32_25 : i32
    %54 = vector.broadcast %53 : i32 to vector<8x1xi32>
    %55 = arith.cmpi sge, %10, %54 : vector<8x1xi32>
    %c1_i32 = arith.constant 1 : i32
    %56 = arith.addi %arg1, %c1_i32 : i32
    %c256_i32_26 = arith.constant 256 : i32
    %57 = arith.muli %56, %c256_i32_26 : i32
    %58 = vector.broadcast %57 : i32 to vector<8x1xi32>
    %59 = arith.cmpi slt, %10, %58 : vector<8x1xi32>
    %60 = arith.andi %55, %59 : vector<8x1xi1>
    %c0_27 = arith.constant 0 : index
    %c0_28 = arith.constant 0 : index
    %61 = vector.load %arg9[%c0_27, %c0_28] : memref<8x1xf32, #tpu.memory_space<vmem>>, vector<8x1xf32>
    %cst_29 = arith.constant 6.400000e+01 : f32
    %62 = vector.broadcast %cst_29 : f32 to vector<8x1xf32>
    %63 = arith.mulf %31, %62 : vector<8x1xf32>
    %cst_30 = arith.constant 0.000000e+00 : f32
    %64 = vector.broadcast %cst_30 : f32 to vector<8x1xf32>
    %65 = arith.select %60, %63, %64 : vector<8x1xi1>, vector<8x1xf32>
    %66 = arith.addf %61, %65 : vector<8x1xf32>
    %c0_31 = arith.constant 0 : index
    %c0_32 = arith.constant 0 : index
    %67 = vector.load %arg9[%c0_31, %c0_32] : memref<8x1xf32, #tpu.memory_space<vmem>>, vector<8x1xf32>
    tpu.vector_store %arg9[%c0_31, %c0_32], %66 {strides = array<i32>} : memref<8x1xf32, #tpu.memory_space<vmem>>, vector<8x1xf32>,
    %c0_i32_33 = arith.constant 0 : i32
    %68 = arith.cmpi eq, %arg1, %c0_i32_33 : i32
    %69 = arith.extui %68 : i1 to i32
    %c0_i32_34 = arith.constant 0 : i32
    %70 = arith.cmpi ne, %69, %c0_i32_34 : i32
    scf.if %70 {
      %c0_35 = arith.constant 0 : index
      %c0_36 = arith.constant 0 : index
      %71 = vector.load %arg7[%c0_35, %c0_36] : memref<8x1xf32, #tpu.memory_space<vmem>>, vector<8x1xf32>
      %c0_37 = arith.constant 0 : index
      %c0_38 = arith.constant 0 : index
      %72 = vector.load %arg8[%c0_37, %c0_38] : memref<8x1xf32, #tpu.memory_space<vmem>>, vector<8x1xf32>
      %73 = math.log %72 : vector<8x1xf32>
      %74 = arith.addf %71, %73 : vector<8x1xf32>
      %c0_39 = arith.constant 0 : index
      %c0_40 = arith.constant 0 : index
      %75 = vector.load %arg9[%c0_39, %c0_40] : memref<8x1xf32, #tpu.memory_space<vmem>>, vector<8x1xf32>
      %76 = arith.subf %74, %75 : vector<8x1xf32>
      %c0_41 = arith.constant 0 : index
      %c0_42 = arith.constant 0 : index
      %77 = vector.load %arg5[%c0_41, %c0_42] : memref<8x1xf32, #tpu.memory_space<vmem>>, vector<8x1xf32>
      tpu.vector_store %arg5[%c0_41, %c0_42], %76 {strides = array<i32>} : memref<8x1xf32, #tpu.memory_space<vmem>>, vector<8x1xf32>,
    } else {
    }
    return
  }
  func.func @transform_0(%arg0: i32, %arg1: i32) -> (i32, i32, i32) {
    %c0_i32 = arith.constant 0 : i32
    %c0_i32_0 = arith.constant 0 : i32
    %c0_i32_1 = arith.constant 0 : i32
    return %arg0, %c0_i32, %c0_i32_0 : i32, i32, i32
  }
  func.func @transform_1(%arg0: i32, %arg1: i32) -> (i32, i32) {
    %c0_i32 = arith.constant 0 : i32
    %c0_i32_0 = arith.constant 0 : i32
    return %c0_i32, %arg1 : i32, i32
  }
  func.func @transform_2(%arg0: i32, %arg1: i32) -> (i32, i32) {
    %c0_i32 = arith.constant 0 : i32
    %c0_i32_0 = arith.constant 0 : i32
    return %arg0, %c0_i32 : i32, i32
  }
  func.func @transform_3(%arg0: i32, %arg1: i32) -> (i32, i32) {
    %c0_i32 = arith.constant 0 : i32
    %c0_i32_0 = arith.constant 0 : i32
    return %arg0, %c0_i32 : i32, i32
  }
}

</mosaic_0001>

<bundles_post_ra>
// kernel: tpu_custom_call.1
= control target key start
LH: loop header
LB: loop body
LE: loop exit
PB: predicated region body
PF: predicated region fallthrough
CT: control target
= control target key end

     0   :  { %8 = vsyncpa [#allocation7], 0  ;;  %s1037_s0 = inlined_call_operand.hbm [shape: f32[2,8,256], index: 0, kind: input, shape index: {}]   ;;  %s1038_s1 = inlined_call_operand.hbm [shape: f32[256,256], index: 1, kind: input, shape index: {}]   ;;  %s1039_s2 = inlined_call_operand.vmem [shape: s32[16,1], index: 2, kind: input, shape index: {}]   ;;  %s1040_s3 = inlined_call_operand.vmem [shape: f32[16,1], index: 3, kind: output, shape index: {}]  }
   0x1   :  { %10 = vsyncpa [#allocation7 + $0x1], 0 }
   0x2   :  { %11 = vsyncpa [#allocation9], 0  ;;  %s878_s12 = smov 0   ;;  %s880_s13 = smov 0  }
   0x3   :  { %s882_s14 = smov 0   ;;  %s884_s15 = smov 0  }
   0x4   :  { %s886_s16 = smov 0   ;;  %s888_s17 = smov 0  }
   0x5 LB: > { %s631_s18 = sadd.s32 4294967295, %s850_s17   ;;  %p633_p0 = scmp.ge.s32.totalorder %s850_s17, 1  ;;  %s850_s17 = sphi %s888_s17, %s17_s17   ;;  %s846_s16 = sphi %s886_s16, %s1049_s16   ;;  %s842_s15 = sphi %s884_s15, %s1048_s15   ;;  %s838_s14 = sphi %s882_s14, %s1047_s14   ;;  %s834_s13 = sphi %s880_s13, %s1046_s13   ;;  %s830_s12 = sphi %s878_s12, %s1045_s12  }
   0x6   : > { %p910_p1 = scmp.eq.s32.totalorder %s631_s18, 0  ;;  %p138_p2 = scmp.lt.s32.totalorder %s850_s17, 3 }
   0x7   : > { %s152_s22 = sshll.u32 %s1038_s1, 4  ;;  %s852_s24 = smov [#allocation8]   ;;  %s153_s22 = int_to_ptr.hbm [resolvable:$true] %s152_s22 }
   0x8   : > { %p918_p3 = pnand %p633_p0, %p138_p2  ;;  %s154_s25 = sshll.u32 %s852_s24, 4  ;;  %s155_s25 = int_to_ptr.vmem [resolvable:$true] %s154_s25 }
   0x9   : > { %s853_s26 = smov 256   ;;  %s854_s27 = smov 16  }
   0xa   : > { %p655_p4 = pneg %p918_p3  ;;  %s29_s28 = sadd.s32 1, %s846_s16 }
   0xb   : > { %p31_p6 = scmp.ge.s32.totalorder %s29_s28, 2  ;;  %p43_p7 = scmp.ne.s32.totalorder %s838_s14, %s834_s13 }
   0xc   : > { %p656_p5 = pnand %p655_p4, %p910_p1  ;;  %p44_p8 = scmp.eq.s32.totalorder %s850_s17, 0 }
   0xd   : > { %s1051_s28 = smov (%p31_p6, %s29_s28), 0  ;;  %s36_s29 = sadd.s32 1, %s838_s14 }
   0xe   : > { %658 = dma.hbm_to_vmem [thread:$0]  (!%p656_p5), %s153_s22, 8192, %s155_s25, [#allocation9], %s853_s26, %s853_s26, %s854_s27  }
   0xf   : > { %p49_p9 = scmp.ne.s32.totalorder %s834_s13, %s830_s12  ;;  %s33_s30 = ssub.s32 %s846_s16, %s1051_s28 }
  0x10   : > { %p937_p10 = por %p44_p8, %p43_p7  ;;  %p34_p11 = scmp.eq.s32.totalorder %s33_s30, 0 }
  0x11   : > { %p943_p12 = por %p910_p1, %p49_p9  ;;  %s168_s6 = sand.u32 1, %s838_s14  }
  0x12   : > { %s648_s7 = sshll.u32 %s846_s16, 4  ;;  %p664_p13 = scmp.lt.s32.totalorder %s850_s17, 2 }
  0x13   : > { %s950_s8 = scalar_select %p34_p11, %s838_s14, %s36_s29  }
  0x14   : > { %s636_s9 = sshll.u32 %s168_s6, 4  ;;  %s177_s12 = scalar_lea.hbm %s1037_s0, %s648_s7 }
  0x15   : > { %s179_s18 = sshll.u32 %s177_s12, 4  ;;  %s172_s20 = scalar_lea.vmem [#allocation6], %s636_s9  ;;  %s180_s18 = int_to_ptr.hbm [resolvable:$true] %s179_s18 }
  0x16   : > { %s181_s21 = sshll.u32 %s172_s20, 4  ;;  %p660_p0 = pnand %p664_p13, %p937_p10  ;;  %s182_s21 = int_to_ptr.vmem [resolvable:$true] %s181_s21 }
  0x17   : > { %s169_s22 = scalar_lea.sflag [#allocation7], %s168_s6  ;;  %197 = sbr.rel (%p918_p3) target bundleno = 762 (0x2fa), region = 32 }
  0x18   : > { %662 = dma.hbm_to_vmem [thread:$0]  (!%p660_p0), %s180_s18, 256, %s182_s21, %s169_s22  }
  0x19   : > { %s199_s24 = sand.u32 (!%p918_p3), 1, %s834_s13  }
  0x1a   : > { %s961_s25 = sshll.u32 (!%p918_p3), %s199_s24, 4  ;;  %s200_s26 = scalar_lea.sflag (!%p918_p3), [#allocation7], %s199_s24 }
  0x1b   : > { %s203_s27 = scalar_lea.vmem (!%p918_p3), [#allocation6], %s961_s25 }
  0x1c   : > { %821 = dma.done.wait (%p943_p12), %s200_s26, 256  }
  0x1d   : > { %823 = vsyncadd (%p943_p12), %s200_s26, 4294967040 }
  0x1e   : > { %825 = dma.done.wait (%p910_p1), [#allocation9], 8192  }
  0x1f   : > { %827 = vsyncadd (%p910_p1), [#allocation9], 4294959104  ;;  %v327_v0 = vld [vmem:[#allocation8 + $0xf8] sm:$0xff]  ;;  %v325_v2 = vld [vmem:[#allocation8 + $0xe8] sm:$0xff]  ;;  %p236_p1 = scmp.lt.s32.totalorder %s842_s15, 1  ;;  %vm290_vm6 = vcmask 7168  }
  0x20   : > { %v359_v1 = vld [vmem:[#allocation8 + $0x1f8] sm:$0xff]  ;;  %400 = vmatpush.msra.mxu2 %v327_v0  ;;  %v357_v3 = vld [vmem:[#allocation8 + $0x1e8] sm:$0xff]  ;;  %v326_v6 = vld [vmem:[#allocation8 + $0xf0] sm:$0xff] }
  0x21   : > { %420 = vmatpush.msra.mxu3 %v359_v1  ;;  %v323_v4 = vld [vmem:[#allocation8 + $0xd8] sm:$0xff]  ;;  %v358_v7 = vld [vmem:[#allocation8 + $0x1f0] sm:$0xff]  ;;  %v324_v8 = vld [vmem:[#allocation8 + $0xe0] sm:$0xff]  ;;  %360 = vmatpush.msra.mxu0 %v326_v6  ;;  %s1053_s15 = smov (!%p236_p1, %s842_s15), 1 }
  0x22   : > { %v355_v5 = vld [vmem:[#allocation8 + $0x1d8] sm:$0xff]  ;;  %401 = vmatpush.msra.mxu2 %v325_v2  ;;  %v356_v9 = vld [vmem:[#allocation8 + $0x1e0] sm:$0xff]  ;;  %380 = vmatpush.msra.mxu1 %v358_v7  ;;  %v321_v10 = vld [vmem:[#allocation8 + $0xc8] sm:$0xff]  ;;  %s642_s19 = sshll.u32 %s1053_s15, 3 }
  0x23   : > { %421 = vmatpush.msra.mxu3 %v357_v3  ;;  %v353_v11 = vld [vmem:[#allocation8 + $0x1c8] sm:$0xff]  ;;  %v322_v12 = vld [vmem:[#allocation8 + $0xd0] sm:$0xff]  ;;  %361 = vmatpush.msra.mxu0 %v324_v8  ;;  %v319_v14 = vld [vmem:[#allocation8 + $0xb8] sm:$0xff]  ;;  %s239_s30 = scalar_lea.vmem %s1039_s2, %s642_s19  ;;  %s243_s6 = scalar_lea.vmem %s1040_s3, %s642_s19 }
  0x24   : > { %402 = vmatpush.msra.mxu2 %v323_v4  ;;  %v354_v13 = vld [vmem:[#allocation8 + $0x1d0] sm:$0xff]  ;;  %381 = vmatpush.msra.mxu1 %v356_v9  ;;  %v351_v15 = vld [vmem:[#allocation8 + $0x1b8] sm:$0xff]  ;;  %v320_v16 = vld [vmem:[#allocation8 + $0xc0] sm:$0xff] }
  0x25   : > { %422 = vmatpush.msra.mxu3 %v355_v5  ;;  %v352_v17 = vld [vmem:[#allocation8 + $0x1c0] sm:$0xff]  ;;  %362 = vmatpush.msra.mxu0 %v322_v12  ;;  %v317_v18 = vld [vmem:[#allocation8 + $0xa8] sm:$0xff]  ;;  %v318_v20 = vld [vmem:[#allocation8 + $0xb0] sm:$0xff] }
  0x26   : > { %403 = vmatpush.msra.mxu2 %v321_v10  ;;  %382 = vmatpush.msra.mxu1 %v354_v13  ;;  %v349_v19 = vld [vmem:[#allocation8 + $0x1a8] sm:$0xff]  ;;  %v350_v21 = vld [vmem:[#allocation8 + $0x1b0] sm:$0xff]  ;;  %v315_v22 = vld [vmem:[#allocation8 + $0x98] sm:$0xff] }
  0x27   : > { %423 = vmatpush.msra.mxu3 %v353_v11  ;;  %363 = vmatpush.msra.mxu0 %v320_v16  ;;  %v347_v23 = vld [vmem:[#allocation8 + $0x198] sm:$0xff]  ;;  %v316_v24 = vld [vmem:[#allocation8 + $0xa0] sm:$0xff]  ;;  %v313_v26 = vld [vmem:[#allocation8 + $0x88] sm:$0xff] }
  0x28   : > { %404 = vmatpush.msra.mxu2 %v319_v14  ;;  %383 = vmatpush.msra.mxu1 %v352_v17  ;;  %v348_v25 = vld [vmem:[#allocation8 + $0x1a0] sm:$0xff]  ;;  %v345_v27 = vld [vmem:[#allocation8 + $0x188] sm:$0xff]  ;;  %v314_v28 = vld [vmem:[#allocation8 + $0x90] sm:$0xff]  ;;  %v855_v17 = vmov 0  }
  0x29   : > { %424 = vmatpush.msra.mxu3 %v351_v15  ;;  %364 = vmatpush.msra.mxu0 %v318_v20  ;;  %v346_v29 = vld [vmem:[#allocation8 + $0x190] sm:$0xff]  ;;  %v311_v30 = vld [vmem:[#allocation8 + $0x78] sm:$0xff]  ;;  %v312_v32 = vld [vmem:[#allocation8 + $0x80] sm:$0xff] }
  0x2a   : > { %405 = vmatpush.msra.mxu2 %v317_v18  ;;  %384 = vmatpush.msra.mxu1 %v350_v21  ;;  %v343_v31 = vld [vmem:[#allocation8 + $0x178] sm:$0xff]  ;;  %v344_v33 = vld [vmem:[#allocation8 + $0x180] sm:$0xff]  ;;  %v309_v34 = vld [vmem:[#allocation8 + $0x68] sm:$0xff] }
  0x2b   : > { %425 = vmatpush.msra.mxu3 %v349_v19  ;;  %365 = vmatpush.msra.mxu0 %v316_v24  ;;  %v341_v35 = vld [vmem:[#allocation8 + $0x168] sm:$0xff]  ;;  %v310_v36 = vld [vmem:[#allocation8 + $0x70] sm:$0xff]  ;;  %v307_v38 = vld [vmem:[#allocation8 + $0x58] sm:$0xff] }
  0x2c   : > { %406 = vmatpush.msra.mxu2 %v315_v22  ;;  %385 = vmatpush.msra.mxu1 %v348_v25  ;;  %v342_v37 = vld [vmem:[#allocation8 + $0x170] sm:$0xff]  ;;  %v339_v39 = vld [vmem:[#allocation8 + $0x158] sm:$0xff]  ;;  %v308_v40 = vld [vmem:[#allocation8 + $0x60] sm:$0xff] }
  0x2d   : > { %426 = vmatpush.msra.mxu3 %v347_v23  ;;  %366 = vmatpush.msra.mxu0 %v314_v28  ;;  %v340_v41 = vld [vmem:[#allocation8 + $0x160] sm:$0xff]  ;;  %v979_v43 = vld [vmem:[%s203_s27 + $0x8] sm:$0xff]  ;;  %v306_v48 = vld [vmem:[#allocation8 + $0x50] sm:$0xff] }
  0x2e   : > { %407 = vmatpush.msra.mxu2 %v313_v26  ;;  %386 = vmatpush.msra.mxu1 %v346_v29  ;;  %v975_v42 = vld [vmem:[%s203_s27] sm:$0xff]  ;;  %v305_v44 = vld [vmem:[#allocation8 + $0x48] sm:$0xff]  ;;  %v251_v47 = vmul.f32 %v979_v43, %v979_v43  ;;  %v303_v50 = vld [vmem:[#allocation8 + $0x38] sm:$0xff] }
  0x2f   : > { %427 = vmatpush.msra.mxu3 %v345_v27  ;;  %367 = vmatpush.msra.mxu0 %v312_v32  ;;  %v337_v45 = vld [vmem:[#allocation8 + $0x148] sm:$0xff]  ;;  %v250_v46 = vmul.f32 %v975_v42, %v975_v42  ;;  %v338_v49 = vld [vmem:[#allocation8 + $0x150] sm:$0xff]  ;;  %v335_v51 = vld [vmem:[#allocation8 + $0x138] sm:$0xff] }
  0x30   : > { %408 = vmatpush.msra.mxu2 %v311_v30  ;;  %387 = vmatpush.msra.mxu1 %v344_v33  ;;  %v258_v53 = vrot.slane %v251_v47, 4  ;;  %v304_v54 = vld [vmem:[#allocation8 + $0x40] sm:$0xff]  ;;  %v301_v56 = vld [vmem:[#allocation8 + $0x28] sm:$0xff]  ;;  %v302_v60 = vld [vmem:[#allocation8 + $0x30] sm:$0xff] }
  0x31   : > { %428 = vmatpush.msra.mxu3 %v343_v31  ;;  %368 = vmatpush.msra.mxu0 %v310_v36  ;;  %v252_v52 = vrot.slane %v250_v46, 4  ;;  %v336_v55 = vld [vmem:[#allocation8 + $0x140] sm:$0xff]  ;;  %v333_v57 = vld [vmem:[#allocation8 + $0x128] sm:$0xff]  ;;  %v334_v61 = vld [vmem:[#allocation8 + $0x130] sm:$0xff]  ;;  %v856_v36 = vmov 0.0  }
  0x32   : > { %409 = vmatpush.msra.mxu2 %v309_v34  ;;  %388 = vmatpush.msra.mxu1 %v342_v37  ;;  %v259_v59 = vadd.f32 %v258_v53, %v251_v47  ;;  %v299_v62 = vld [vmem:[#allocation8 + $0x18] sm:$0xff]  ;;  %v300_v2 = vld [vmem:[#allocation8 + $0x20] sm:$0xff]  ;;  %v297_v4 = vld [vmem:[#allocation8 + $0x8] sm:$0xff]  ;;  %293 = vst.msk [vmem:[#allocation5] sm:$0xff] %vm290_vm6, %v856_v36  ;;  %v445_v37 = vlaneseq }
  0x33   : > { %429 = vmatpush.msra.mxu3 %v341_v35  ;;  %369 = vmatpush.msra.mxu0 %v308_v40  ;;  %v253_v58 = vadd.f32 %v252_v52, %v250_v46  ;;  %v331_v63 = vld [vmem:[#allocation8 + $0x118] sm:$0xff]  ;;  %v332_v3 = vld [vmem:[#allocation8 + $0x120] sm:$0xff]  ;;  %v329_v5 = vld [vmem:[#allocation8 + $0x108] sm:$0xff]  ;;  %292 = vst.msk [vmem:[#allocation4] sm:$0xff] %vm290_vm6, %v856_v36 }
  0x34   : > { %410 = vmatpush.msra.mxu2 %v307_v38  ;;  %389 = vmatpush.msra.mxu1 %v340_v41  ;;  %v260_v1 = vrot.slane %v259_v59, 2  ;;  %v298_v8 = vld [vmem:[#allocation8 + $0x10] sm:$0xff]  ;;  %v296_v12 = vld [vmem:[#allocation8] sm:$0xff]  ;;  %v996_v16 = vld [vmem:[%s239_s30] sm:$0xff]  ;;  %v446_v40 = vand.u32 127, %v445_v37 }
  0x35   : > { %430 = vmatpush.msra.mxu3 %v339_v39  ;;  %370 = vmatpush.msra.mxu0 %v306_v48  ;;  %v254_v0 = vrot.slane %v253_v58, 2  ;;  %v330_v9 = vld [vmem:[#allocation8 + $0x110] sm:$0xff]  ;;  %v328_v13 = vld [vmem:[#allocation8 + $0x100] sm:$0xff]  ;;  %vm512_vm11 = vcmp.ge.s32.totalorder %v996_v16, 0  ;;  %vm516_vm12 = vcmp.lt.s32.totalorder %v996_v16, 256 }
  0x36   : > { %411 = vmatpush.msra.mxu2 %v305_v44  ;;  %390 = vmatpush.msra.mxu1 %v338_v49  ;;  %v261_v7 = vadd.f32 %v260_v1, %v259_v59  ;;  %vm517_vm13 = vmand %vm512_vm11, %vm516_vm12 }
  0x37   : > { %431 = vmatpush.msra.mxu3 %v337_v45  ;;  %371 = vmatpush.msra.mxu0 %v304_v54  ;;  %v255_v6 = vadd.f32 %v254_v0, %v253_v58 }
  0x38   : > { %412 = vmatpush.msra.mxu2 %v303_v50  ;;  %391 = vmatpush.msra.mxu1 %v336_v55  ;;  %v262_v11 = vrot.slane %v261_v7, 1 }
  0x39   : > { %432 = vmatpush.msra.mxu3 %v335_v51  ;;  %372 = vmatpush.msra.mxu0 %v302_v60  ;;  %v256_v10 = vrot.slane %v255_v6, 1 }
  0x3a   : > { %413 = vmatpush.msra.mxu2 %v301_v56  ;;  %392 = vmatpush.msra.mxu1 %v334_v61  ;;  %v263_v15 = vadd.f32 %v262_v11, %v261_v7  ;;  %v857_v56 = vmov -inf  }
  0x3b   : > { %433 = vmatpush.msra.mxu3 %v333_v57  ;;  %373 = vmatpush.msra.mxu0 %v300_v2  ;;  %v257_v14 = vadd.f32 %v256_v10, %v255_v6  ;;  %291 = vst.msk [vmem:[#allocation3] sm:$0xff] %vm290_vm6, %v857_v56  ;;  %v518_v6 = vld [vmem:[#allocation5] sm:$0xff] }
  0x3c   : > { %414 = vmatpush.msra.mxu2 %v299_v62  ;;  %393 = vmatpush.msra.mxu1 %v332_v3  ;;  %v265_v19 = vmax.f32 %v263_v15, 1e-24 }
  0x3d   : > { %434 = vmatpush.msra.mxu3 %v331_v63  ;;  %374 = vmatpush.msra.mxu0 %v298_v8  ;;  %v264_v18 = vmax.f32 %v257_v14, 1e-24 }
  0x3e   : > { %415 = vmatpush.msra.mxu2 %v297_v4  ;;  %394 = vmatpush.msra.mxu1 %v330_v9  ;;  %vm282_vm2 = vweird.f32 %v265_v19 }
  0x3f   : > { %435 = vmatpush.msra.mxu3 %v329_v5  ;;  %720 = vset.pattern.permute.xlu0 %v855_v17  ;;  %722 = vrsqrt.f32 %v264_v18  ;;  %vm272_vm0 = vweird.f32 %v264_v18 }
  0x40   : > { %721 = vset.pattern.permute.xlu1 %v855_v17  ;;  %375 = vmatpush.msra.mxu0 %v296_v12  ;;  %724 = vrsqrt.f32 %v265_v19 }
  0x41   : > { %395 = vmatpush.msra.mxu1 %v328_v13  ;;  %453 = vperm.xlu0 %720, %v996_v16  }
  0x42   : > { %v484_v15 = vld [vmem:[#allocation3] sm:$0xff] }
  0x45   : > { %v723_v20 = vpop.eup %722 }
  0x46   : > { %v725_v21 = vpop.eup %724  ;;  %v267_v22 = vmul.f32 %v723_v20, %v264_v18  ;;  %vm273_vm1 = vweird.f32 %v723_v20 }
  0x47   : > { %v277_v23 = vmul.f32 %v725_v21, %v265_v19  ;;  %vm283_vm3 = vweird.f32 %v725_v21  ;;  %vm274_vm4 = vmor %vm272_vm0, %vm273_vm1 }
  0x48   : > { %v268_v24 = vmul.f32 %v723_v20, %v267_v22  ;;  %vm284_vm5 = vmor %vm282_vm2, %vm283_vm3 }
  0x49   : > { %v278_v25 = vmul.f32 %v725_v21, %v277_v23 }
  0x4a   : > { %v269_v26 = vmul.f32 0.5, %v268_v24 }
  0x4b   : > { %v279_v27 = vmul.f32 0.5, %v278_v25 }
  0x4c   : > { %v270_v28 = vsub.f32 1.5, %v269_v26 }
  0x4d   : > { %v280_v29 = vsub.f32 1.5, %v279_v27 }
  0x4e   : > { %v271_v30 = vmul.f32 %v723_v20, %v270_v28 }
  0x4f   : > { %v281_v31 = vmul.f32 %v725_v21, %v280_v29  ;;  %v492_v29 = vld [vmem:[#allocation4] sm:$0xff] }
  0x50   : > { %v275_v32 = vsel %vm274_vm4, %v723_v20, %v271_v30 }
  0x51   : > { %v286_v33 = vmul.f32 %v275_v32, %v975_v42  ;;  %v285_v34 = vsel %vm284_vm5, %v725_v21, %v281_v31  ;;  %v447_v42 = vadd.s32 128, %v446_v40 }
  0x52   : > { %v287_v35 = vmul.f32 %v285_v34, %v979_v43 }
  0x53   : > { %416 = vmatmul.f32.vlgmr.msra.gmra.mxu2 %v286_v33  ;;  %376 = vmatmul.f32.vlgmr.msra.gmra.mxu0 %v286_v33 }
  0x54   : > { %436 = vmatmul.f32.vlgmr.msra.gmra.mxu3 %v287_v35  ;;  %396 = vmatmul.f32.vlgmr.msra.gmra.mxu1 %v287_v35 }
  0xb3   : > { %v454_v44 = vpop.permute.xlu0 %453 }
  0xb4   : > { %vm455_vm7 = vcmp.eq.s32.totalorder %v446_v40, %v454_v44  ;;  %vm456_vm8 = vcmp.eq.s32.totalorder %v447_v42, %v454_v44 }
  0xd0   : > { %v377_v38 = vpop.f32.mrf.mxu0 }
  0xd1   : > { %v397_v39 = vpop.f32.mrf.mxu1 }
  0xd2   : > { %v398_v41 = vadd.f32 %v397_v39, %v377_v38 }
  0xd4   : > { %v644_v45 = vclamps-f32 %v398_v41, 1.0 }
  0xd6   : > { %v417_v46 = vpop.f32.mrf.mxu2  ;;  %v457_v49 = vsel %vm455_vm7, %v644_v45, 0.0 }
  0xd7   : > { %v437_v43 = vpop.f32.mrf.mxu3 }
  0xd8   : > { %v438_v47 = vadd.f32 %v437_v43, %v417_v46 }
  0xda   : > { %v645_v48 = vclamps-f32 %v438_v47, 1.0 }
  0xdc   : > { %v458_v50 = vsel %vm456_vm8, %v645_v48, 0.0 }
  0xdd   : > { %v459_v51 = vadd.f32 %v458_v50, %v457_v49 }
  0xdf   : > { %460 = vadd.xlane.f32.xlu0 %v459_v51 }
 0x152   : > { %v461_v52 = vpop.xlane.xlu0 %460 }
 0x153   : > { %v462_v53 = vmul.f32 %v461_v52, %v461_v52  ;;  %v477_v3 = vmul.f32 0.87758255, %v461_v52 }
 0x155   : > { %v463_v54 = vsub.f32 1.0, %v462_v53 }
 0x157   : > { %v464_v55 = vmax.f32 %v463_v54, 0.0 }
 0x159   : > { %726 = vrsqrt.f32 %v464_v55  ;;  %vm472_vm9 = vcmp.eq.f32.partialorder %v464_v55, inf  ;;  %v475_v0 = vand.u32 2147483648, %v464_v55  ;;  %vm474_vm10 = vcmp.eq.f32.partialorder %v464_v55, 0.0 }
 0x15f   : > { %v727_v57 = vpop.eup %726 }
 0x160   : > { %v466_v58 = vmul.f32 %v727_v57, %v464_v55 }
 0x162   : > { %v467_v59 = vmul.f32 %v727_v57, %v466_v58 }
 0x164   : > { %v468_v60 = vmul.f32 0.5, %v467_v59 }
 0x166   : > { %v469_v61 = vsub.f32 1.5, %v468_v60 }
 0x168   : > { %v470_v62 = vmul.f32 %v727_v57, %v469_v61 }
 0x16a   : > { %v471_v63 = vmul.f32 %v470_v62, %v464_v55 }
 0x16c   : > { %v473_v1 = vsel %vm472_vm9, %v464_v55, %v471_v63 }
 0x16d   : > { %v476_v2 = vsel %vm474_vm10, %v475_v0, %v473_v1 }
 0x16e   : > { %v478_v4 = vmul.f32 0.47942555, %v476_v2 }
 0x170   : > { %v479_v5 = vsub.f32 %v477_v3, %v478_v4 }
 0x172   : > { %v519_v7 = vmul.f32 64.0, %v479_v5  ;;  %v480_v8 = vsel %vm455_vm7, %v479_v5, %v644_v45  ;;  %v481_v9 = vsel %vm456_vm8, %v479_v5, %v645_v48 }
 0x173   : > { %v482_v10 = vmul.f32 64.0, %v480_v8  ;;  %v483_v11 = vmul.f32 64.0, %v481_v9 }
 0x174   : > { %v520_v12 = vsel %vm517_vm13, %v519_v7, 0.0 }
 0x175   : > { %v521_v13 = vadd.f32 %v520_v12, %v518_v6  ;;  %v485_v14 = vmax.f32 %v482_v10, %v483_v11 }
 0x177   : > { %522 = vst.msk [vmem:[#allocation5] sm:$0xff] %vm290_vm6, %v521_v13  ;;  %486 = vmax.xlane.f32.xlu1 %v485_v14 }
 0x17e   : > { %v531_v38 = vld [vmem:[#allocation5] sm:$0xff] }
 0x1ea   : > { %v487_v16 = vpop.xlane.xlu1 %486 }
 0x1eb   : > { %v488_v17 = vmax.f32 %v484_v15, %v487_v16 }
 0x1ed   : > { %v489_v18 = vsub.f32 %v484_v15, %v488_v17  ;;  %511 = vst.msk [vmem:[#allocation3] sm:$0xff] %vm290_vm6, %v488_v17  ;;  %496 = vperm.xlu1 %721, %v488_v17  }
 0x1ef   : > { %v490_v27 = vmul.f32 1.442695, %v489_v18 }
 0x1f4   : > { %v526_v36 = vld [vmem:[#allocation3] sm:$0xff] }
 0x25f   : > { %v497_v19 = vpop.permute.xlu1 %496 }
 0x260   : > { %v499_v20 = vsub.f32 %v482_v10, %v497_v19  ;;  %v500_v21 = vsub.f32 %v483_v11, %v497_v19 }
 0x262   : > { %v501_v22 = vmul.f32 1.442695, %v499_v20  ;;  %v503_v23 = vmul.f32 1.442695, %v500_v21 }
 0x264   : > { %728 = vpow2.f32 %v501_v22 }
 0x265   : > { %730 = vpow2.f32 %v503_v23 }
 0x266   : > { %732 = vpow2.f32 %v490_v27 }
 0x26a   : > { %v729_v24 = vpop.eup %728 }
 0x26b   : > { %v731_v25 = vpop.eup %730 }
 0x26c   : > { %v505_v26 = vadd.f32 %v731_v25, %v729_v24  ;;  %v733_v28 = vpop.eup %732 }
 0x26d   : > { %v493_v30 = vmul.f32 %v733_v28, %v492_v29 }
 0x26e   : > { %506 = vadd.xlane.f32.xlu2 %v505_v26 }
 0x2e1   : > { %v507_v31 = vpop.xlane.xlu2 %506 }
 0x2e2   : > { %v508_v32 = vadd.f32 %v507_v31, %v493_v30 }
 0x2e4   : > { %510 = vst.msk [vmem:[#allocation4] sm:$0xff] %vm290_vm6, %v508_v32 }
 0x2eb   : > { %v527_v33 = vld [vmem:[#allocation4] sm:$0xff] }
 0x2ec   : > { %734 = vlog2.f32 %v527_v33 }
 0x2f2   : > { %v735_v34 = vpop.eup %734 }
 0x2f3   : > { %v529_v35 = vmul.f32 0.6931472, %v735_v34 }
 0x2f5   : > { %v530_v37 = vadd.f32 %v529_v35, %v526_v36 }
 0x2f7   : > { %v532_v39 = vsub.f32 %v530_v37, %v531_v38 }
 0x2f9   : > { %533 = vst.msk [vmem:[%s243_s6] sm:$0xff] %vm290_vm6, %v532_v39 }
 0x2fa PF: > { %s17_s17 = sadd.s32 1, %s850_s17   ;;  %s1045_s12 = smov %s834_s13 }
 0x2fb   : > { %p14_p2 = scmp.ge.s32.totalorder %s17_s17, 4   ;;  %s1046_s13 = smov %s838_s14 }
 0x2fc   : > { %s1047_s14 = smov %s950_s8  ;;  %s1048_s15 = smov %s846_s16 }
 0x2fd   : > { %s1049_s16 = smov %s1051_s28  ;;  %16 = sbr.rel (!%p14_p2) target bundleno = 5 (0x5), region = 88 }
 0x302   :  { %553 = vsyncpa [#allocation7], 1 }
 0x303   :  { %555 = vsyncpa [#allocation7 + $0x1], 1 }
 0x304   :  { %556 = vsyncpa [#allocation9], 1 }

</bundles_post_ra>
